<compile_context>
chip_gen: v6e
topology: v6e:2x2x1
jax: 0.10.0
libtpu: 0.0.40
codegen_flags: <defaults>
</compile_context>

<pallas_src>
import functools
import math

import jax
import jax.numpy as jnp
import numpy as np
from jax.experimental import pallas as pl
from jax.experimental.pallas import tpu as pltpu


# ----------------------------- in-kernel helpers ------------------------------
def _silu_k(x, approx):
    # x * sigmoid(x); the divide goes to the EUP via pl.reciprocal (approx=True
    # on the bf16 path) and co-issues with the exp instead of a VALU expansion.
    return x * pl.reciprocal(1.0 + jnp.exp(-x), approx=approx)


def _conv_taps(acc_ref, h, w_ref, *, T, Sb, K, pad):
    """Temporal conv as K shifted matmuls accumulated into a VMEM scratch.

    h:      (T*Sb, C_in) value in the compute dtype (rows are T-major).
    w_ref:  (K, C_in, C_out) ref in the compute dtype.
    acc_ref:(T*Sb, C_out) f32 scratch.
    Zero padding along T is realized by clipping tap row ranges.
    """
    acc_ref[...] = jnp.dot(h, w_ref[pad], preferred_element_type=jnp.float32)
    for kt in range(K):
        if kt == pad:
            continue
        d = kt - pad
        t_lo = max(0, -d)
        t_hi = T - max(0, d)
        if t_hi <= t_lo:
            continue
        n = (t_hi - t_lo) * Sb          # static, Sb-aligned (sublane aligned)
        dst = t_lo * Sb
        src = (t_lo + d) * Sb
        acc_ref[dst:dst + n] += jnp.dot(h[src:src + n], w_ref[kt],
                                        preferred_element_type=jnp.float32)


def _conv_packed(acc_ref, h, w_ref, *, T, Sb, K, pad):
    """Temporal conv as ONE wide-contraction matmul.

    LHS = K shifted copies of h concatenated along channels (T-padding as
    explicit zero rows), weights packed to (K*C_in, C_out).  Keeps the MXU fed
    when C_in alone would leave most of the contraction dimension idle.
    """
    C_in = h.shape[-1]
    parts = []
    for kt in range(K):
        d = kt - pad
        if d == 0:
            parts.append(h)
        elif abs(d) >= T:
            parts.append(jnp.zeros_like(h))
        elif d > 0:
            parts.append(jnp.concatenate(
                [h[d * Sb:], jnp.zeros((d * Sb, C_in), h.dtype)], axis=0))
        else:
            dd = -d
            parts.append(jnp.concatenate(
                [jnp.zeros((dd * Sb, C_in), h.dtype), h[:(T - dd) * Sb]], axis=0))
    lhs = jnp.concatenate(parts, axis=-1)                 # (T*Sb, K*C_in)
    acc_ref[...] = jnp.dot(lhs, w_ref[...], preferred_element_type=jnp.float32)


# --------------------------------- kernels ------------------------------------
def _stats_kernel(x_ref, s_ref, *, T, Sb):
    """Per-tile partial sums (sum, sum of squares) over rows, per channel."""
    x = x_ref[0].reshape(T * Sb, -1).astype(jnp.float32)
    s1 = jnp.sum(x, axis=0, keepdims=True)
    s2 = jnp.sum(x * x, axis=0, keepdims=True)
    s_ref[0, 0] = jnp.concatenate([s1, s2], axis=0)


def _main1_kernel(x_ref, a1_ref, b1_ref, w1_ref, tp_ref,
                  h1_ref, st_ref, acc_ref, *, T, Sb, K, pad, cdt, fuse, approx):
    """GN1-apply (folded scale/shift) + SiLU + temporal conv1 + (temb+bias) add.

    Also emits per-tile partial sums of the result for GroupNorm2.
    """
    C_out = acc_ref.shape[-1]
    x = x_ref[0].reshape(T * Sb, -1).astype(jnp.float32)
    h = _silu_k(x * a1_ref[0] + b1_ref[0], approx)        # GN1 + SiLU, f32
    conv = _conv_packed if fuse else _conv_taps
    conv(acc_ref, h.astype(cdt), w1_ref, T=T, Sb=Sb, K=K, pad=pad)
    h1 = acc_ref[...] + tp_ref[0]                         # conv1 bias folded in
    # GroupNorm2 partial statistics (f32, unrounded) while the tile is live.
    s1 = jnp.sum(h1, axis=0, keepdims=True)
    s2 = jnp.sum(h1 * h1, axis=0, keepdims=True)
    st_ref[0, 0] = jnp.concatenate([s1, s2], axis=0)
    h1_ref[0] = h1.reshape(T, Sb, C_out).astype(h1_ref.dtype)


def _main2_kernel(h1_ref, x_ref, a2_ref, b2_ref, w2_ref, c2b_ref,
                  out_ref, acc_ref, *, T, Sb, K, pad, cdt, fuse, approx,
                  inv_scale):
    """GN2-apply + SiLU + (dropout=identity) + temporal conv2 + residual."""
    C_out = acc_ref.shape[-1]
    h1 = h1_ref[0].reshape(T * Sb, -1).astype(jnp.float32)
    g = _silu_k(h1 * a2_ref[0] + b2_ref[0], approx)       # GN2 + SiLU, f32
    # dropout (p=0 / inference) == identity
    conv = _conv_packed if fuse else _conv_taps
    conv(acc_ref, g.astype(cdt), w2_ref, T=T, Sb=Sb, K=K, pad=pad)
    res = x_ref[0].reshape(T * Sb, -1).astype(jnp.float32)
    out = (res + acc_ref[...] + c2b_ref[...]) * inv_scale
    out_ref[0] = out.reshape(T, Sb, C_out).astype(out_ref.dtype)


# ------------------------------ wrapper helpers --------------------------------
def _silu_host(x):
    return x * jax.nn.sigmoid(x)


def _tpu_vmem_bytes():
    try:
        return int(pltpu.get_tpu_info().vmem_capacity_bytes)
    except Exception:
        return 64 * 1024 * 1024       # conservative fallback (v7x per-TC VMEM)


def _pick_spatial_tile(S, T, C, *, target_bytes, min_tiles=1, spatial_tile=None):
    """Largest divisor of S (sublane aligned when possible) whose f32 activation
    tile fits target_bytes, keeping at least `min_tiles` grid steps along S so
    both v7x TensorCores have work even at B=1."""
    if spatial_tile is not None:
        assert S % spatial_tile == 0, "spatial_tile must divide H*W"
        return int(spatial_tile)
    divs = [d for d in range(1, S + 1)
            if S % d == 0 and (d % 8 == 0 or d == S)]
    capped = [d for d in divs if S // d >= min_tiles]
    cands = capped if capped else divs
    fitting = [d for d in cands if T * d * C * 4 <= target_bytes]
    return max(fitting) if fitting else min(cands)


def _gn_scale_shift(sums, gamma, beta, num_groups, rows_per_batch, eps):
    """Fold GroupNorm stats + affine into per-(batch, channel) scale/shift."""
    B, _, C = sums.shape
    cg = C // num_groups
    s1 = sums[:, 0].reshape(B, num_groups, cg).sum(axis=-1)     # (B, G)
    s2 = sums[:, 1].reshape(B, num_groups, cg).sum(axis=-1)
    n = float(rows_per_batch * cg)
    mean = s1 / n
    # E[x^2]-mean^2 with f32 accumulation; clamp guards against cancellation.
    # TODO(synk): Welford-style combine if production activations have an
    # extreme mean/std ratio.
    var = jnp.maximum(s2 / n - mean * mean, 0.0)
    rstd = jax.lax.rsqrt(var + eps)
    mean_c = jnp.repeat(mean, cg, axis=-1)                      # (B, C)
    rstd_c = jnp.repeat(rstd, cg, axis=-1)
    scale = gamma[None, :].astype(jnp.float32) * rstd_c
    shift = beta[None, :].astype(jnp.float32) - mean_c * scale
    return scale.reshape(B, 1, C), shift.reshape(B, 1, C)


# ---------------------------------- wrapper ------------------------------------
def temporal_resnet_block_channels_last(x, temb, params, *, groups,
                                        groups_out=None, temporal_kernel_size=3,
                                        eps=1e-6, output_scale_factor=1.0,
                                        compute_dtype=jnp.bfloat16,
                                        spatial_tile=None, out_dtype=None):
    """Core forward on channels-last x: (B, T, S=H*W, C).

    Use this entry point directly when the surrounding model keeps activations
    channels-last: the NCDHW<->channels-last transposes then disappear.
    """
    # TODO(synk): conv_shortcut / use_in_shortcut branch (in_channels !=
    # out_channels) not implemented; this wrapper requires equal channels.
    # TODO(synk): optionally pad C to a multiple of 128 (lane-dense stores) when
    # the caller can consume padded activations; toy C=32 keeps masked stores.
    B, T, S, C_in = x.shape
    K = int(temporal_kernel_size)
    assert K % 2 == 1, "temporal_kernel_size must be odd"
    pad = (K - 1) // 2
    C_out = params["conv1_w"].shape[-1]
    assert C_in == C_out, "use_in_shortcut path not implemented"
    if groups_out is None:
        groups_out = groups
    assert C_in % groups == 0 and C_out % groups_out == 0
    eps = float(eps)
    rows = T * S
    if out_dtype is None:
        out_dtype = x.dtype

    is_f32 = np.dtype(compute_dtype) == np.dtype(np.float32)
    approx = not is_f32
    if not is_f32:
        # x is read from HBM three times (stats, GN1-apply, residual): moving it
        # in compute_dtype halves that traffic; accumulation stays f32 in-kernel.
        x = x.astype(compute_dtype)

    # Generation-aware sizing: v5e/v6e have 128 MiB VMEM, v7x 64 MiB per TC.
    vmem_cap = _tpu_vmem_bytes()
    vmem_limit = min(int(vmem_cap * 0.85), 112 * 1024 * 1024)   # leave headroom
    cp = pltpu.CompilerParams(
        dimension_semantics=("parallel", "parallel"),
        vmem_limit_bytes=vmem_limit)

    min_tiles = 2 if B == 1 else 1        # keep both v7x TCs busy even at B=1
    Sb = _pick_spatial_tile(S, T, max(C_in, C_out),
                            target_bytes=vmem_cap // 20,
                            min_tiles=min_tiles, spatial_tile=spatial_tile)
    nS = S // Sb
    # Pass 1 is a pure HBM stream (no scratch / weights): give it a bigger tile.
    Sb_st = _pick_spatial_tile(S, T, C_in, target_bytes=vmem_cap // 8,
                               min_tiles=min_tiles, spatial_tile=spatial_tile)
    nS_st = S // Sb_st

    # Fuse the K taps into one wide-contraction matmul at small channel counts.
    fuse_taps = (K > 1) and max(C_in, C_out) <= 256
    if fuse_taps:
        w1 = params["conv1_w"].reshape(K * C_in, C_out).astype(compute_dtype)
        w2 = params["conv2_w"].reshape(K * C_out, C_out).astype(compute_dtype)
        w1_spec = pl.BlockSpec((K * C_in, C_out), lambda b, j: (0, 0))
        w2_spec = pl.BlockSpec((K * C_out, C_out), lambda b, j: (0, 0))
    else:
        # TODO(synk): for very large C on v7x, tile C_out (extra grid axis) so the
        # resident (K,C,C) weights + double-buffered activations fit 64 MiB.
        w1 = params["conv1_w"].astype(compute_dtype)
        w2 = params["conv2_w"].astype(compute_dtype)
        w1_spec = pl.BlockSpec((K, C_in, C_out), lambda b, j: (0, 0, 0))
        w2_spec = pl.BlockSpec((K, C_out, C_out), lambda b, j: (0, 0, 0))

    # ----- pass 1: GroupNorm1 partial statistics over x -----
    stats1 = pl.pallas_call(
        functools.partial(_stats_kernel, T=T, Sb=Sb_st),
        out_shape=jax.ShapeDtypeStruct((B, nS_st, 2, C_in), jnp.float32),
        grid_spec=pltpu.PrefetchScalarGridSpec(
            num_scalar_prefetch=0, grid=(B, nS_st),
            in_specs=[pl.BlockSpec((1, T, Sb_st, C_in),
                                   lambda b, j: (b, 0, j, 0))],
            out_specs=pl.BlockSpec((1, 1, 2, C_in),
                                   lambda b, j: (b, j, 0, 0))),
        compiler_params=cp,
    )(x)

    scale1, shift1 = _gn_scale_shift(stats1.sum(axis=1), params["norm1_gamma"],
                                     params["norm1_beta"], groups, rows, eps)

    # temb projection (tiny (B, temb_ch) matmul) hoisted to the wrapper; conv1
    # bias folded into the same (B,1,C_out) tensor (one fewer kernel input).
    if temb is not None:
        tp = (jnp.dot(_silu_host(temb.astype(jnp.float32)),
                      params["time_emb_w"].astype(jnp.float32))
              + params["time_emb_b"].astype(jnp.float32))
    else:
        tp = jnp.zeros((B, C_out), jnp.float32)
    tp_total = (tp + params["conv1_b"].astype(jnp.float32)[None, :]
                ).reshape(B, 1, C_out)
    c2b = params["conv2_b"].astype(jnp.float32).reshape(1, C_out)

    # ----- pass 2: GN1 apply + SiLU + conv1 + temb (+ GN2 partial stats) -----
    h1, stats2 = pl.pallas_call(
        functools.partial(_main1_kernel, T=T, Sb=Sb, K=K, pad=pad,
                          cdt=compute_dtype, fuse=fuse_taps, approx=approx),
        out_shape=(jax.ShapeDtypeStruct((B, T, S, C_out), compute_dtype),
                   jax.ShapeDtypeStruct((B, nS, 2, C_out), jnp.float32)),
        grid_spec=pltpu.PrefetchScalarGridSpec(
            num_scalar_prefetch=0, grid=(B, nS),
            in_specs=[
                pl.BlockSpec((1, T, Sb, C_in), lambda b, j: (b, 0, j, 0)),
                pl.BlockSpec((1, 1, C_in), lambda b, j: (b, 0, 0)),
                pl.BlockSpec((1, 1, C_in), lambda b, j: (b, 0, 0)),
                w1_spec,
                pl.BlockSpec((1, 1, C_out), lambda b, j: (b, 0, 0)),
            ],
            out_specs=[
                pl.BlockSpec((1, T, Sb, C_out), lambda b, j: (b, 0, j, 0)),
                pl.BlockSpec((1, 1, 2, C_out), lambda b, j: (b, j, 0, 0)),
            ],
            scratch_shapes=[pltpu.VMEM((T * Sb, C_out), jnp.float32)]),
        compiler_params=cp,
    )(x, scale1, shift1, w1, tp_total)

    scale2, shift2 = _gn_scale_shift(stats2.sum(axis=1), params["norm2_gamma"],
                                     params["norm2_beta"], groups_out, rows, eps)

    # ----- pass 3: GN2 apply + SiLU + conv2 + residual add + scale -----
    out = pl.pallas_call(
        functools.partial(_main2_kernel, T=T, Sb=Sb, K=K, pad=pad,
                          cdt=compute_dtype, fuse=fuse_taps, approx=approx,
                          inv_scale=float(1.0 / output_scale_factor)),
        out_shape=jax.ShapeDtypeStruct((B, T, S, C_out), out_dtype),
        grid_spec=pltpu.PrefetchScalarGridSpec(
            num_scalar_prefetch=0, grid=(B, nS),
            in_specs=[
                pl.BlockSpec((1, T, Sb, C_out), lambda b, j: (b, 0, j, 0)),
                pl.BlockSpec((1, T, Sb, C_in), lambda b, j: (b, 0, j, 0)),
                pl.BlockSpec((1, 1, C_out), lambda b, j: (b, 0, 0)),
                pl.BlockSpec((1, 1, C_out), lambda b, j: (b, 0, 0)),
                w2_spec,
                pl.BlockSpec((1, C_out), lambda b, j: (0, 0)),
            ],
            out_specs=pl.BlockSpec((1, T, Sb, C_out),
                                   lambda b, j: (b, 0, j, 0)),
            scratch_shapes=[pltpu.VMEM((T * Sb, C_out), jnp.float32)]),
        compiler_params=cp,
    )(h1, x, scale2, shift2, w2, c2b)

    return out


def temporal_resnet_block(x_ncdhw, temb, params, **kwargs):
    """NCDHW convenience wrapper (matches the PyTorch module layout).

    The transposes below are plain XLA ops fused into the surrounding graph;
    prefer temporal_resnet_block_channels_last when the model is channels-last.
    """
    B, C_in, T, H, W = x_ncdhw.shape
    x = jnp.transpose(x_ncdhw, (0, 2, 3, 4, 1)).reshape(B, T, H * W, C_in)
    out = temporal_resnet_block_channels_last(
        x, temb, params, out_dtype=x_ncdhw.dtype, **kwargs)
    C_out = out.shape[-1]
    return jnp.transpose(out.reshape(B, T, H, W, C_out), (0, 4, 1, 2, 3))


# ----------------------------- pure-JAX reference -----------------------------
def reference_forward(x, temb, params, *, groups, groups_out, K, pad, eps,
                      output_scale_factor):
    def gn(h, gamma, beta, G):
        B, C, T, H, W = h.shape
        hg = h.reshape(B, G, C // G, T, H, W)
        mean = hg.mean(axis=(2, 3, 4, 5), keepdims=True)
        var = hg.var(axis=(2, 3, 4, 5), keepdims=True)
        hn = ((hg - mean) / jnp.sqrt(var + eps)).reshape(B, C, T, H, W)
        return hn * gamma[None, :, None, None, None] + beta[None, :, None, None, None]

    def silu(h):
        return h * jax.nn.sigmoid(h)

    def tconv(h, w, bias):
        B, Ci, T, H, W = h.shape
        Co = w.shape[-1]
        hp = jnp.pad(h, ((0, 0), (0, 0), (pad, pad), (0, 0), (0, 0)))
        out = jnp.zeros((B, Co, T, H, W), jnp.float32)
        for kt in range(K):
            out = out + jnp.einsum("bcthw,cd->bdthw", hp[:, :, kt:kt + T], w[kt])
        return out + bias[None, :, None, None, None]

    h = gn(x, params["norm1_gamma"], params["norm1_beta"], groups)
    h = silu(h)
    h = tconv(h, params["conv1_w"], params["conv1_b"])
    tp = jnp.dot(silu(temb), params["time_emb_w"]) + params["time_emb_b"]
    h = h + tp[:, :, None, None, None]
    h = gn(h, params["norm2_gamma"], params["norm2_beta"], groups_out)
    h = silu(h)
    h = tconv(h, params["conv2_w"], params["conv2_b"])
    return (x + h) / output_scale_factor


# -------------------------- deterministic param init --------------------------
def init_params(key, *, in_channels, out_channels, temb_channels, K,
                zero_initialize=True):
    ks = jax.random.split(key, 10)
    p = {}
    p["norm1_gamma"] = 1.0 + 0.1 * jax.random.normal(ks[0], (in_channels,), jnp.float32)
    p["norm1_beta"] = 0.1 * jax.random.normal(ks[1], (in_channels,), jnp.float32)
    p["conv1_w"] = jax.random.normal(ks[2], (K, in_channels, out_channels),
                                     jnp.float32) / math.sqrt(in_channels * K)
    p["conv1_b"] = 0.1 * jax.random.normal(ks[3], (out_channels,), jnp.float32)
    p["time_emb_w"] = jax.random.normal(ks[4], (temb_channels, out_channels),
                                        jnp.float32) / math.sqrt(temb_channels)
    p["time_emb_b"] = 0.1 * jax.random.normal(ks[5], (out_channels,), jnp.float32)
    p["norm2_gamma"] = 1.0 + 0.1 * jax.random.normal(ks[6], (out_channels,), jnp.float32)
    p["norm2_beta"] = 0.1 * jax.random.normal(ks[7], (out_channels,), jnp.float32)
    if zero_initialize:  # module default: conv2 is zero_module()'d
        p["conv2_w"] = jnp.zeros((K, out_channels, out_channels), jnp.float32)
        p["conv2_b"] = jnp.zeros((out_channels,), jnp.float32)
    else:
        p["conv2_w"] = jax.random.normal(ks[8], (K, out_channels, out_channels),
                                         jnp.float32) / math.sqrt(out_channels * K)
        p["conv2_b"] = 0.1 * jax.random.normal(ks[9], (out_channels,), jnp.float32)
    return p


if __name__ == "__main__":
    B, C, T, H, W = 2, 32, 8, 16, 16     # small shapes; in_channels == out_channels
    temb_ch = 64
    groups = 8
    K = 3
    pad = (K - 1) // 2
    eps = 1e-6
    scale = 1.0

    key = jax.random.PRNGKey(0)
    kx, ktb, kp = jax.random.split(key, 3)
    x = jax.random.normal(kx, (B, C, T, H, W), jnp.float32)
    temb = jax.random.normal(ktb, (B, temb_ch), jnp.float32)

    # zero_init=True matches the module default (zero_initialize=True);
    # zero_init=False additionally exercises the conv2 matmuls numerically.
    for zero_init in (True, False):
        params = init_params(kp, in_channels=C, out_channels=C,
                             temb_channels=temb_ch, K=K,
                             zero_initialize=zero_init)
        ref = reference_forward(x, temb, params, groups=groups,
                                groups_out=groups, K=K, pad=pad, eps=eps,
                                output_scale_factor=scale)
        for cdt, tol in ((jnp.float32, 5e-4), (jnp.bfloat16, 5e-2)):
            out = temporal_resnet_block(
                x, temb, params, groups=groups, temporal_kernel_size=K,
                eps=eps, output_scale_factor=scale, compute_dtype=cdt,
                spatial_tile=64)   # force 4 spatial tiles to exercise tiling
            out = jax.block_until_ready(out)
            np.testing.assert_allclose(np.asarray(out), np.asarray(ref),
                                       rtol=tol, atol=tol)

    # auto (generation-aware) tile selection, bf16 path
    params = init_params(kp, in_channels=C, out_channels=C,
                         temb_channels=temb_ch, K=K, zero_initialize=False)
    ref = reference_forward(x, temb, params, groups=groups, groups_out=groups,
                            K=K, pad=pad, eps=eps, output_scale_factor=scale)
    out = temporal_resnet_block(x, temb, params, groups=groups,
                                temporal_kernel_size=K, eps=eps,
                                output_scale_factor=scale,
                                compute_dtype=jnp.bfloat16)
    out = jax.block_until_ready(out)
    np.testing.assert_allclose(np.asarray(out), np.asarray(ref),
                               rtol=5e-2, atol=5e-2)

    # B=1 exercises the "keep >= 2 parallel grid steps" tile cap
    ref1 = reference_forward(x[:1], temb[:1], params, groups=groups,
                             groups_out=groups, K=K, pad=pad, eps=eps,
                             output_scale_factor=scale)
    out1 = temporal_resnet_block(x[:1], temb[:1], params, groups=groups,
                                 temporal_kernel_size=K, eps=eps,
                                 output_scale_factor=scale,
                                 compute_dtype=jnp.bfloat16)
    out1 = jax.block_until_ready(out1)
    np.testing.assert_allclose(np.asarray(out1), np.asarray(ref1),
                               rtol=5e-2, atol=5e-2)

    print("KERNEL_OK")
</pallas_src>

<mosaic_0001>
module attributes {stable_mosaic.version = 11 : i64} {
  func.func @_stats_kernel(%arg0: i32, %arg1: i32, %arg2: memref<1x8x64x32xf32, #tpu.memory_space<vmem>>, %arg3: memref<1x1x2x32xf32, #tpu.memory_space<vmem>>) attributes {dimension_semantics = [#tpu.dimension_semantics<parallel>, #tpu.dimension_semantics<parallel>], iteration_bounds = array<i64: 2, 4>, scalar_prefetch = 0 : i64, scratch_operands = 0 : i64, tpu.core_type = #tpu.core_type<tc>, window_params = [{transform_indices = @transform_0, window_bounds = array<i64: 1, 8, 64, 32>}, {transform_indices = @transform_1, window_bounds = array<i64: 1, 1, 2, 32>}]} {
    %c0 = arith.constant 0 : index
    %c0_0 = arith.constant 0 : index
    %c0_1 = arith.constant 0 : index
    %c0_2 = arith.constant 0 : index
    %0 = vector.load %arg2[%c0, %c0_0, %c0_1, %c0_2] : memref<1x8x64x32xf32, #tpu.memory_space<vmem>>, vector<1x8x64x32xf32>
    %1 = vector.shape_cast %0 : vector<1x8x64x32xf32> to vector<8x64x32xf32>
    %2 = vector.shape_cast %1 : vector<8x64x32xf32> to vector<512x32xf32>
    %cst = arith.constant dense<0.000000e+00> : vector<32xf32>
    %3 = vector.multi_reduction <add>, %2, %cst [0] : vector<512x32xf32> to vector<32xf32>
    %4 = vector.shape_cast %3 : vector<32xf32> to vector<1x32xf32>
    %5 = arith.mulf %2, %2 : vector<512x32xf32>
    %cst_3 = arith.constant dense<0.000000e+00> : vector<32xf32>
    %6 = vector.multi_reduction <add>, %5, %cst_3 [0] : vector<512x32xf32> to vector<32xf32>
    %7 = vector.shape_cast %6 : vector<32xf32> to vector<1x32xf32>
    %8 = tpu.concatenate %4, %7 in 0 : vector<1x32xf32>, vector<1x32xf32> -> vector<2x32xf32>
    %c0_4 = arith.constant 0 : index
    %c0_5 = arith.constant 0 : index
    %c0_6 = arith.constant 0 : index
    %c0_7 = arith.constant 0 : index
    %9 = vector.load %arg3[%c0_4, %c0_5, %c0_6, %c0_7] : memref<1x1x2x32xf32, #tpu.memory_space<vmem>>, vector<1x1x2x32xf32>
    %10 = vector.shape_cast %9 : vector<1x1x2x32xf32> to vector<2x32xf32>
    %11 = vector.shape_cast %8 : vector<2x32xf32> to vector<1x1x2x32xf32>
    tpu.vector_store %arg3[%c0_4, %c0_5, %c0_6, %c0_7], %11 {strides = array<i32>} : memref<1x1x2x32xf32, #tpu.memory_space<vmem>>, vector<1x1x2x32xf32>,
    return
  }
  func.func @transform_0(%arg0: i32, %arg1: i32) -> (i32, i32, i32, i32) {
    %c0_i32 = arith.constant 0 : i32
    %c0_i32_0 = arith.constant 0 : i32
    %c0_i32_1 = arith.constant 0 : i32
    return %arg0, %c0_i32, %arg1, %c0_i32_0 : i32, i32, i32, i32
  }
  func.func @transform_1(%arg0: i32, %arg1: i32) -> (i32, i32, i32, i32) {
    %c0_i32 = arith.constant 0 : i32
    %c0_i32_0 = arith.constant 0 : i32
    %c0_i32_1 = arith.constant 0 : i32
    return %arg0, %arg1, %c0_i32, %c0_i32_0 : i32, i32, i32, i32
  }
}

</mosaic_0001>

<bundles_post_ra>
// kernel: tpu_custom_call.1
= control target key start
LH: loop header
LB: loop body
LE: loop exit
PB: predicated region body
PF: predicated region fallthrough
CT: control target
= control target key end

     0   :  { %6 = vsyncpa [#allocation4], 0  ;;  %s2110_s0 = inlined_call_operand.vmem [shape: f32[2,8,256,32], index: 0, kind: input, shape index: {}]   ;;  %s2111_s1 = inlined_call_operand.hbm [shape: f32[2,4,2,32], index: 1, kind: output, shape index: {}]  }
   0x1   :  { %8 = vsyncpa [#allocation4 + $0x1], 0  ;;  %s1110_s6 = smov 0   ;;  %s1112_s7 = smov 0  }
   0x2   :  { %s1114_s8 = smov 0   ;;  %s1116_s9 = smov 0  }
   0x3   :  { %s1118_s10 = smov 0   ;;  %s1120_s11 = smov 0  }
   0x4   :  { %s1122_s12 = smov 0   ;;  %s1124_s13 = smov 0  }
   0x5 LB: > { %s918_s14 = sadd.s32 4294967295, %s1097_s13   ;;  %s919_s15 = sadd.s32 4294967294, %s1097_s13   ;;  %s1097_s13 = sphi %s1124_s13, %s14_s13   ;;  %s1093_s12 = sphi %s1122_s12, %s2247_s12   ;;  %s1089_s11 = sphi %s1120_s11, %s2246_s11   ;;  %s1085_s10 = sphi %s1118_s10, %s2245_s10   ;;  %s1081_s9 = sphi %s1116_s9, %s2244_s9   ;;  %s1077_s8 = sphi %s1114_s8, %s2243_s8   ;;  %s1073_s7 = sphi %s1112_s7, %s2242_s7   ;;  %s1069_s6 = sphi %s1110_s6, %s2241_s6  }
   0x6   : > { %s23_s16 = sadd.s32 1, %s1089_s11  ;;  %s26_s17 = sadd.s32 1, %s1093_s12 }
   0x7   : > { %p24_p0 = scmp.ge.s32.totalorder %s23_s16, 4  ;;  %p42_p1 = scmp.ne.s32.totalorder %s1077_s8, %s1073_s7 }
   0x8   : > { %p43_p2 = scmp.eq.s32.totalorder %s1097_s13, 0  ;;  %p74_p5 = scmp.eq.s32.totalorder %s918_s14, 7 }
   0x9   : > { %s2249_s16 = smov (%p24_p0, %s23_s16), 0  ;;  %s2251_s17 = smov (!%p24_p0, %s26_s17), %s1093_s12 }
   0xa   : > { %s31_s18 = ssub.s32 %s1089_s11, %s2249_s16  ;;  %p1162_p3 = por %p43_p2, %p42_p1 }
   0xb   : > { %p28_p4 = scmp.ge.s32.totalorder %s2251_s17, 2  ;;  %p79_p6 = scmp.ne.s32.totalorder %s1073_s7, %s1069_s6 }
   0xc   : > { %p80_p7 = scmp.eq.s32.totalorder %s919_s15, 7  ;;  %p1170_p8 = por %p74_p5, %p42_p1 }
   0xd   : > { %s2253_s17 = smov (%p28_p4, %s2251_s17), 0  ;;  %s35_s24 = sadd.s32 1, %s1077_s8 }
   0xe   : > { %p1174_p9 = por %p80_p7, %p79_p6  ;;  %s30_s22 = ssub.s32 %s1093_s12, %s2253_s17 }
   0xf   : > { %s32_s23 = sor.u32 %s31_s18, %s30_s22  ;;  %p921_p11 = scmp.ge.s32.totalorder %s1097_s13, 8 }
  0x10   : > { %p33_p10 = scmp.eq.s32.totalorder %s32_s23, 0 }
  0x11   : > { %96 = sbr.rel (%p921_p11) target bundleno = 61 (0x3d), region = 16 }
  0x12   : > { %s1182_s25 = scalar_select %p33_p10, %s1077_s8, %s35_s24  }
  0x16   : > { %99 = sbr.rel (!%p1162_p3) target bundleno = 61 (0x3d), region = 20  ;;  %s101_s26 = sand.u32 (%p1162_p3), 1, %s1077_s8  }
  0x17   : > { %s923_s27 = sshll.u32 (%p1162_p3), %s1089_s11, 3  ;;  %s922_s28 = sshll.u32 (%p1162_p3), %s101_s26, 9 }
  0x18   : > { %s924_s29 = sshll.u32 (%p1162_p3), %s1093_s12, 8  ;;  %s1198_s14 = scalar_lea.vmem (%p1162_p3), [#allocation2], %s922_s28 }
  0x19   : > { %s106_s30 = sadd.s32 (%p1162_p3), %s924_s29, %s923_s27 }
  0x1a   : > { %s925_s2 = sshll.u32 (%p1162_p3), %s106_s30, 3 }
  0x1b   : > { %s1193_s5 = scalar_lea.vmem %s2110_s0, %s925_s2 }
  0x1c   : > { %v263_v0 = vld [vmem:[%s1193_s5] sm:$0xff]  ;;  %v265_v1 = vld [vmem:[%s1193_s5 + $0x8] sm:$0xff]  ;;  %v267_v2 = vld [vmem:[%s1193_s5 + $0x10] sm:$0xff] }
  0x1d   : > { %264 = vst [vmem:[%s1198_s14] sm:$0xff] %v263_v0  ;;  %266 = vst [vmem:[%s1198_s14 + $0x8] sm:$0xff] %v265_v1  ;;  %v269_v3 = vld [vmem:[%s1193_s5 + $0x18] sm:$0xff]  ;;  %v271_v4 = vld [vmem:[%s1193_s5 + $0x20] sm:$0xff] }
  0x1e   : > { %268 = vst [vmem:[%s1198_s14 + $0x10] sm:$0xff] %v267_v2  ;;  %v273_v5 = vld [vmem:[%s1193_s5 + $0x28] sm:$0xff]  ;;  %270 = vst [vmem:[%s1198_s14 + $0x18] sm:$0xff] %v269_v3  ;;  %v275_v6 = vld [vmem:[%s1193_s5 + $0x30] sm:$0xff] }
  0x1f   : > { %272 = vst [vmem:[%s1198_s14 + $0x20] sm:$0xff] %v271_v4  ;;  %274 = vst [vmem:[%s1198_s14 + $0x28] sm:$0xff] %v273_v5  ;;  %v277_v7 = vld [vmem:[%s1193_s5 + $0x38] sm:$0xff]  ;;  %v279_v8 = vld [vmem:[%s1193_s5 + $0x100] sm:$0xff] }
  0x20   : > { %276 = vst [vmem:[%s1198_s14 + $0x30] sm:$0xff] %v275_v6  ;;  %278 = vst [vmem:[%s1198_s14 + $0x38] sm:$0xff] %v277_v7  ;;  %v281_v9 = vld [vmem:[%s1193_s5 + $0x108] sm:$0xff]  ;;  %v283_v10 = vld [vmem:[%s1193_s5 + $0x110] sm:$0xff] }
  0x21   : > { %280 = vst [vmem:[%s1198_s14 + $0x40] sm:$0xff] %v279_v8  ;;  %v285_v11 = vld [vmem:[%s1193_s5 + $0x118] sm:$0xff]  ;;  %282 = vst [vmem:[%s1198_s14 + $0x48] sm:$0xff] %v281_v9  ;;  %v287_v12 = vld [vmem:[%s1193_s5 + $0x120] sm:$0xff] }
  0x22   : > { %284 = vst [vmem:[%s1198_s14 + $0x50] sm:$0xff] %v283_v10  ;;  %286 = vst [vmem:[%s1198_s14 + $0x58] sm:$0xff] %v285_v11  ;;  %v289_v13 = vld [vmem:[%s1193_s5 + $0x128] sm:$0xff]  ;;  %v291_v14 = vld [vmem:[%s1193_s5 + $0x130] sm:$0xff] }
  0x23   : > { %288 = vst [vmem:[%s1198_s14 + $0x60] sm:$0xff] %v287_v12  ;;  %290 = vst [vmem:[%s1198_s14 + $0x68] sm:$0xff] %v289_v13  ;;  %v293_v15 = vld [vmem:[%s1193_s5 + $0x138] sm:$0xff]  ;;  %v295_v16 = vld [vmem:[%s1193_s5 + $0x200] sm:$0xff] }
  0x24   : > { %292 = vst [vmem:[%s1198_s14 + $0x70] sm:$0xff] %v291_v14  ;;  %v297_v17 = vld [vmem:[%s1193_s5 + $0x208] sm:$0xff]  ;;  %294 = vst [vmem:[%s1198_s14 + $0x78] sm:$0xff] %v293_v15  ;;  %v299_v18 = vld [vmem:[%s1193_s5 + $0x210] sm:$0xff] }
  0x25   : > { %296 = vst [vmem:[%s1198_s14 + $0x80] sm:$0xff] %v295_v16  ;;  %298 = vst [vmem:[%s1198_s14 + $0x88] sm:$0xff] %v297_v17  ;;  %v301_v19 = vld [vmem:[%s1193_s5 + $0x218] sm:$0xff]  ;;  %v303_v20 = vld [vmem:[%s1193_s5 + $0x220] sm:$0xff] }
  0x26   : > { %300 = vst [vmem:[%s1198_s14 + $0x90] sm:$0xff] %v299_v18  ;;  %302 = vst [vmem:[%s1198_s14 + $0x98] sm:$0xff] %v301_v19  ;;  %v305_v21 = vld [vmem:[%s1193_s5 + $0x228] sm:$0xff]  ;;  %v307_v22 = vld [vmem:[%s1193_s5 + $0x230] sm:$0xff] }
  0x27   : > { %304 = vst [vmem:[%s1198_s14 + $0xa0] sm:$0xff] %v303_v20  ;;  %v309_v23 = vld [vmem:[%s1193_s5 + $0x238] sm:$0xff]  ;;  %306 = vst [vmem:[%s1198_s14 + $0xa8] sm:$0xff] %v305_v21  ;;  %v311_v24 = vld [vmem:[%s1193_s5 + $0x300] sm:$0xff] }
  0x28   : > { %308 = vst [vmem:[%s1198_s14 + $0xb0] sm:$0xff] %v307_v22  ;;  %310 = vst [vmem:[%s1198_s14 + $0xb8] sm:$0xff] %v309_v23  ;;  %v313_v25 = vld [vmem:[%s1193_s5 + $0x308] sm:$0xff]  ;;  %v315_v26 = vld [vmem:[%s1193_s5 + $0x310] sm:$0xff] }
  0x29   : > { %312 = vst [vmem:[%s1198_s14 + $0xc0] sm:$0xff] %v311_v24  ;;  %314 = vst [vmem:[%s1198_s14 + $0xc8] sm:$0xff] %v313_v25  ;;  %v317_v27 = vld [vmem:[%s1193_s5 + $0x318] sm:$0xff]  ;;  %v319_v28 = vld [vmem:[%s1193_s5 + $0x320] sm:$0xff] }
  0x2a   : > { %316 = vst [vmem:[%s1198_s14 + $0xd0] sm:$0xff] %v315_v26  ;;  %v321_v29 = vld [vmem:[%s1193_s5 + $0x328] sm:$0xff]  ;;  %318 = vst [vmem:[%s1198_s14 + $0xd8] sm:$0xff] %v317_v27  ;;  %v323_v30 = vld [vmem:[%s1193_s5 + $0x330] sm:$0xff] }
  0x2b   : > { %320 = vst [vmem:[%s1198_s14 + $0xe0] sm:$0xff] %v319_v28  ;;  %322 = vst [vmem:[%s1198_s14 + $0xe8] sm:$0xff] %v321_v29  ;;  %v325_v31 = vld [vmem:[%s1193_s5 + $0x338] sm:$0xff]  ;;  %v327_v32 = vld [vmem:[%s1193_s5 + $0x400] sm:$0xff] }
  0x2c   : > { %324 = vst [vmem:[%s1198_s14 + $0xf0] sm:$0xff] %v323_v30  ;;  %326 = vst [vmem:[%s1198_s14 + $0xf8] sm:$0xff] %v325_v31  ;;  %v329_v33 = vld [vmem:[%s1193_s5 + $0x408] sm:$0xff]  ;;  %v331_v34 = vld [vmem:[%s1193_s5 + $0x410] sm:$0xff] }
  0x2d   : > { %328 = vst [vmem:[%s1198_s14 + $0x100] sm:$0xff] %v327_v32  ;;  %v333_v35 = vld [vmem:[%s1193_s5 + $0x418] sm:$0xff]  ;;  %330 = vst [vmem:[%s1198_s14 + $0x108] sm:$0xff] %v329_v33  ;;  %v335_v36 = vld [vmem:[%s1193_s5 + $0x420] sm:$0xff] }
  0x2e   : > { %332 = vst [vmem:[%s1198_s14 + $0x110] sm:$0xff] %v331_v34  ;;  %334 = vst [vmem:[%s1198_s14 + $0x118] sm:$0xff] %v333_v35  ;;  %v337_v37 = vld [vmem:[%s1193_s5 + $0x428] sm:$0xff]  ;;  %v339_v38 = vld [vmem:[%s1193_s5 + $0x430] sm:$0xff] }
  0x2f   : > { %336 = vst [vmem:[%s1198_s14 + $0x120] sm:$0xff] %v335_v36  ;;  %338 = vst [vmem:[%s1198_s14 + $0x128] sm:$0xff] %v337_v37  ;;  %v341_v39 = vld [vmem:[%s1193_s5 + $0x438] sm:$0xff]  ;;  %v343_v40 = vld [vmem:[%s1193_s5 + $0x500] sm:$0xff] }
  0x30   : > { %340 = vst [vmem:[%s1198_s14 + $0x130] sm:$0xff] %v339_v38  ;;  %v345_v41 = vld [vmem:[%s1193_s5 + $0x508] sm:$0xff]  ;;  %342 = vst [vmem:[%s1198_s14 + $0x138] sm:$0xff] %v341_v39  ;;  %v347_v42 = vld [vmem:[%s1193_s5 + $0x510] sm:$0xff] }
  0x31   : > { %344 = vst [vmem:[%s1198_s14 + $0x140] sm:$0xff] %v343_v40  ;;  %346 = vst [vmem:[%s1198_s14 + $0x148] sm:$0xff] %v345_v41  ;;  %v349_v43 = vld [vmem:[%s1193_s5 + $0x518] sm:$0xff]  ;;  %v351_v44 = vld [vmem:[%s1193_s5 + $0x520] sm:$0xff] }
  0x32   : > { %348 = vst [vmem:[%s1198_s14 + $0x150] sm:$0xff] %v347_v42  ;;  %350 = vst [vmem:[%s1198_s14 + $0x158] sm:$0xff] %v349_v43  ;;  %v353_v45 = vld [vmem:[%s1193_s5 + $0x528] sm:$0xff]  ;;  %v355_v46 = vld [vmem:[%s1193_s5 + $0x530] sm:$0xff] }
  0x33   : > { %352 = vst [vmem:[%s1198_s14 + $0x160] sm:$0xff] %v351_v44  ;;  %v357_v47 = vld [vmem:[%s1193_s5 + $0x538] sm:$0xff]  ;;  %354 = vst [vmem:[%s1198_s14 + $0x168] sm:$0xff] %v353_v45  ;;  %v359_v48 = vld [vmem:[%s1193_s5 + $0x600] sm:$0xff] }
  0x34   : > { %356 = vst [vmem:[%s1198_s14 + $0x170] sm:$0xff] %v355_v46  ;;  %358 = vst [vmem:[%s1198_s14 + $0x178] sm:$0xff] %v357_v47  ;;  %v361_v49 = vld [vmem:[%s1193_s5 + $0x608] sm:$0xff]  ;;  %v363_v50 = vld [vmem:[%s1193_s5 + $0x610] sm:$0xff] }
  0x35   : > { %360 = vst [vmem:[%s1198_s14 + $0x180] sm:$0xff] %v359_v48  ;;  %362 = vst [vmem:[%s1198_s14 + $0x188] sm:$0xff] %v361_v49  ;;  %v365_v51 = vld [vmem:[%s1193_s5 + $0x618] sm:$0xff]  ;;  %v367_v52 = vld [vmem:[%s1193_s5 + $0x620] sm:$0xff] }
  0x36   : > { %364 = vst [vmem:[%s1198_s14 + $0x190] sm:$0xff] %v363_v50  ;;  %v369_v53 = vld [vmem:[%s1193_s5 + $0x628] sm:$0xff]  ;;  %366 = vst [vmem:[%s1198_s14 + $0x198] sm:$0xff] %v365_v51  ;;  %v371_v54 = vld [vmem:[%s1193_s5 + $0x630] sm:$0xff] }
  0x37   : > { %368 = vst [vmem:[%s1198_s14 + $0x1a0] sm:$0xff] %v367_v52  ;;  %370 = vst [vmem:[%s1198_s14 + $0x1a8] sm:$0xff] %v369_v53  ;;  %v373_v55 = vld [vmem:[%s1193_s5 + $0x638] sm:$0xff]  ;;  %v375_v56 = vld [vmem:[%s1193_s5 + $0x700] sm:$0xff] }
  0x38   : > { %372 = vst [vmem:[%s1198_s14 + $0x1b0] sm:$0xff] %v371_v54  ;;  %374 = vst [vmem:[%s1198_s14 + $0x1b8] sm:$0xff] %v373_v55  ;;  %v377_v57 = vld [vmem:[%s1193_s5 + $0x708] sm:$0xff]  ;;  %v379_v58 = vld [vmem:[%s1193_s5 + $0x710] sm:$0xff] }
  0x39   : > { %376 = vst [vmem:[%s1198_s14 + $0x1c0] sm:$0xff] %v375_v56  ;;  %v381_v59 = vld [vmem:[%s1193_s5 + $0x718] sm:$0xff]  ;;  %378 = vst [vmem:[%s1198_s14 + $0x1c8] sm:$0xff] %v377_v57  ;;  %v383_v60 = vld [vmem:[%s1193_s5 + $0x720] sm:$0xff] }
  0x3a   : > { %380 = vst [vmem:[%s1198_s14 + $0x1d0] sm:$0xff] %v379_v58  ;;  %382 = vst [vmem:[%s1198_s14 + $0x1d8] sm:$0xff] %v381_v59  ;;  %v385_v61 = vld [vmem:[%s1193_s5 + $0x728] sm:$0xff]  ;;  %v387_v62 = vld [vmem:[%s1193_s5 + $0x730] sm:$0xff] }
  0x3b   : > { %384 = vst [vmem:[%s1198_s14 + $0x1e0] sm:$0xff] %v383_v60  ;;  %386 = vst [vmem:[%s1198_s14 + $0x1e8] sm:$0xff] %v385_v61  ;;  %v389_v63 = vld [vmem:[%s1193_s5 + $0x738] sm:$0xff] }
  0x3c   : > { %388 = vst [vmem:[%s1198_s14 + $0x1f0] sm:$0xff] %v387_v62  ;;  %390 = vst [vmem:[%s1198_s14 + $0x1f8] sm:$0xff] %v389_v63 }
  0x3d PF: > { %p926_p12 = scmp.ge.s32.totalorder %s1097_s13, 1  ;;  %p395_p13 = scmp.lt.s32.totalorder %s1097_s13, 9 }
  0x3f   : > { %p396_p0 = pnand %p926_p12, %p395_p13 }
  0x41   : > { %399 = sbr.rel (%p396_p0) target bundleno = 263 (0x107), region = 58 }
  0x46   : > { %s1328_s15 = sand.u32 1, %s1073_s7   ;;  %vm486_vm0 = vcmask 261120   ;;  %s930_s23 = sshll.u32 %s1085_s10, 2  ;;  %vm817_vm1 = vcmask 1040384   ;;  %vm819_vm2 = vcmask 254976  }
  0x47   : > { %s927_s18 = sshll.u32 %s1328_s15, 9  ;;  %s928_s22 = sshll.u32 %s1328_s15, 1 }
  0x48   : > { %s1331_s19 = scalar_lea.vmem [#allocation2], %s927_s18  ;;  %s833_s24 = sadd.s32 %s1081_s9, %s930_s23 }
  0x49   : > { %v1334_v0 = vld [vmem:[%s1331_s19] sm:$0xff]  ;;  %v1337_v1 = vld [vmem:[%s1331_s19 + $0x8] sm:$0xff]  ;;  %v1340_v2 = vld [vmem:[%s1331_s19 + $0x10] sm:$0xff]  ;;  %s931_s26 = sshll.u32 %s833_s24, 5  ;;  %s420_s27 = scalar_lea.vmem [#allocation3], %s928_s22 }
  0x4a   : > { %v487_v3 = vsel %vm486_vm0, %v1334_v0, 0.0  ;;  %v488_v4 = vsel %vm486_vm0, %v1337_v1, 0.0  ;;  %v490_v5 = vsel %vm486_vm0, %v1340_v2, 0.0  ;;  %v1349_v6 = vld [vmem:[%s1331_s19 + $0x18] sm:$0xff]  ;;  %v1354_v9 = vld [vmem:[%s1331_s19 + $0x20] sm:$0xff]  ;;  %v1359_v12 = vld [vmem:[%s1331_s19 + $0x28] sm:$0xff]  ;;  %s2063_s2 = scalar_lea.hbm %s2111_s1, %s931_s26 }
  0x4b   : > { %v489_v7 = vadd.f32 %v488_v4, %v487_v3  ;;  %v492_v8 = vsel %vm486_vm0, %v1349_v6, 0.0  ;;  %v494_v11 = vsel %vm486_vm0, %v1354_v9, 0.0  ;;  %v496_v14 = vsel %vm486_vm0, %v1359_v12, 0.0  ;;  %v1364_v15 = vld [vmem:[%s1331_s19 + $0x30] sm:$0xff]  ;;  %v1367_v17 = vld [vmem:[%s1331_s19 + $0x38] sm:$0xff]  ;;  %v1370_v18 = vld [vmem:[%s1331_s19 + $0x40] sm:$0xff] }
  0x4c   : > { %v498_v19 = vsel %vm486_vm0, %v1364_v15, 0.0  ;;  %v1375_v20 = vld [vmem:[%s1331_s19 + $0x48] sm:$0xff]  ;;  %v1378_v21 = vld [vmem:[%s1331_s19 + $0x50] sm:$0xff]  ;;  %v1381_v22 = vld [vmem:[%s1331_s19 + $0x58] sm:$0xff]  ;;  %v500_v24 = vsel %vm486_vm0, %v1367_v17, 0.0  ;;  %v502_v25 = vsel %vm486_vm0, %v1370_v18, 0.0 }
  0x4d   : > { %v491_v10 = vadd.f32 %v490_v5, %v489_v7  ;;  %v1388_v26 = vld [vmem:[%s1331_s19 + $0x108] sm:$0xff]  ;;  %v1391_v27 = vld [vmem:[%s1331_s19 + $0x110] sm:$0xff]  ;;  %v1394_v28 = vld [vmem:[%s1331_s19 + $0x118] sm:$0xff]  ;;  %v504_v29 = vsel %vm486_vm0, %v1375_v20, 0.0  ;;  %v506_v30 = vsel %vm486_vm0, %v1378_v21, 0.0  ;;  %v1402_v31 = vsel %vm486_vm0, %v1381_v22, 0.0 }
  0x4e   : > { %v1405_v32 = vld [vmem:[%s1331_s19 + $0x120] sm:$0xff]  ;;  %v1408_v33 = vld [vmem:[%s1331_s19 + $0x128] sm:$0xff]  ;;  %v1411_v34 = vld [vmem:[%s1331_s19 + $0x130] sm:$0xff]  ;;  %v1415_v36 = vsel %vm486_vm0, %v1388_v26, 0.0  ;;  %v1419_v37 = vsel %vm486_vm0, %v1391_v27, 0.0  ;;  %v1423_v38 = vsel %vm486_vm0, %v1394_v28, 0.0 }
  0x4f   : > { %v493_v13 = vadd.f32 %v492_v8, %v491_v10  ;;  %2135 = vst [vmem:[#allocation6_spill] sm:$0xff] %v1415_v36  ;;  %2136 = vst [vmem:[#allocation7_spill] sm:$0xff] %v1419_v37  ;;  %v1426_v39 = vld [vmem:[%s1331_s19 + $0x138] sm:$0xff]  ;;  %v1429_v40 = vld [vmem:[%s1331_s19 + $0x140] sm:$0xff]  ;;  %v1436_v42 = vsel %vm486_vm0, %v1405_v32, 0.0  ;;  %v1440_v43 = vsel %vm486_vm0, %v1408_v33, 0.0  ;;  %v622_v36 = vmul.f32 %v1340_v2, %v1340_v2 }
  0x50   : > { %2137 = vst [vmem:[#allocation8_spill] sm:$0xff] %v1423_v38  ;;  %v1432_v41 = vld [vmem:[%s1331_s19 + $0x148] sm:$0xff]  ;;  %2138 = vst [vmem:[#allocation9_spill] sm:$0xff] %v1436_v42  ;;  %v1444_v44 = vsel %vm486_vm0, %v1411_v34, 0.0  ;;  %v1447_v45 = vld [vmem:[%s1331_s19 + $0x150] sm:$0xff]  ;;  %v1457_v49 = vsel %vm486_vm0, %v1426_v39, 0.0 }
  0x51   : > { %v495_v16 = vadd.f32 %v494_v11, %v493_v13  ;;  %2139 = vst [vmem:[#allocation10_spill] sm:$0xff] %v1440_v43  ;;  %2140 = vst [vmem:[#allocation11_spill] sm:$0xff] %v1444_v44  ;;  %v1450_v46 = vld [vmem:[%s1331_s19 + $0x158] sm:$0xff]  ;;  %v1453_v47 = vld [vmem:[%s1331_s19 + $0x160] sm:$0xff]  ;;  %v1461_v50 = vsel %vm486_vm0, %v1429_v40, 0.0  ;;  %v1465_v51 = vsel %vm486_vm0, %v1432_v41, 0.0 }
  0x52   : > { %2141 = vst [vmem:[#allocation12_spill] sm:$0xff] %v1457_v49  ;;  %2142 = vst [vmem:[#allocation13_spill] sm:$0xff] %v1461_v50  ;;  %v1468_v52 = vld [vmem:[%s1331_s19 + $0x168] sm:$0xff]  ;;  %v1471_v53 = vld [vmem:[%s1331_s19 + $0x170] sm:$0xff]  ;;  %v1478_v55 = vsel %vm486_vm0, %v1447_v45, 0.0  ;;  %v1482_v56 = vsel %vm486_vm0, %v1450_v46, 0.0 }
  0x53   : > { %v497_v23 = vadd.f32 %v496_v14, %v495_v16  ;;  %2143 = vst [vmem:[#allocation14_spill] sm:$0xff] %v1465_v51  ;;  %v1474_v54 = vld [vmem:[%s1331_s19 + $0x178] sm:$0xff]  ;;  %2144 = vst [vmem:[#allocation15_spill] sm:$0xff] %v1478_v55  ;;  %v1486_v57 = vsel %vm486_vm0, %v1453_v47, 0.0  ;;  %v1489_v58 = vld [vmem:[%s1331_s19 + $0x180] sm:$0xff]  ;;  %v1499_v62 = vsel %vm486_vm0, %v1468_v52, 0.0 }
  0x54   : > { %2145 = vst [vmem:[#allocation16_spill] sm:$0xff] %v1482_v56  ;;  %2146 = vst [vmem:[#allocation17_spill] sm:$0xff] %v1486_v57  ;;  %v1492_v59 = vld [vmem:[%s1331_s19 + $0x188] sm:$0xff]  ;;  %v1495_v60 = vld [vmem:[%s1331_s19 + $0x190] sm:$0xff]  ;;  %v1503_v63 = vsel %vm486_vm0, %v1471_v53, 0.0  ;;  %v1507_v3 = vsel %vm486_vm0, %v1474_v54, 0.0 }
  0x55   : > { %v499_v35 = vadd.f32 %v498_v19, %v497_v23  ;;  %2147 = vst [vmem:[#allocation18_spill] sm:$0xff] %v1499_v62  ;;  %2148 = vst [vmem:[#allocation19_spill] sm:$0xff] %v1503_v63  ;;  %v1510_v4 = vld [vmem:[%s1331_s19 + $0x198] sm:$0xff]  ;;  %v1513_v5 = vld [vmem:[%s1331_s19 + $0x1a0] sm:$0xff]  ;;  %v1520_v8 = vsel %vm486_vm0, %v1489_v58, 0.0  ;;  %v1524_v10 = vsel %vm486_vm0, %v1492_v59, 0.0 }
  0x56   : > { %2149 = vst [vmem:[#allocation20_spill] sm:$0xff] %v1507_v3  ;;  %v1516_v7 = vld [vmem:[%s1331_s19 + $0x1a8] sm:$0xff]  ;;  %2150 = vst [vmem:[#allocation21_spill] sm:$0xff] %v1520_v8  ;;  %v1528_v11 = vsel %vm486_vm0, %v1495_v60, 0.0  ;;  %v1531_v13 = vld [vmem:[%s1331_s19 + $0x60] sm:$0xff]  ;;  %s837_s28 = sshll.u32 %s420_s27, 4  ;;  %s838_s28 = int_to_ptr.vmem [resolvable:$true] %s837_s28 }
  0x57   : > { %v501_v48 = vadd.f32 %v500_v24, %v499_v35  ;;  %2151 = vst [vmem:[#allocation22_spill] sm:$0xff] %v1524_v10  ;;  %2152 = vst [vmem:[#allocation23_spill] sm:$0xff] %v1528_v11  ;;  %v1534_v14 = vld [vmem:[%s1331_s19 + $0x1b0] sm:$0xff]  ;;  %v1537_v16 = vld [vmem:[%s1331_s19 + $0x1b8] sm:$0xff]  ;;  %v1544_v24 = vsel %vm486_vm0, %v1510_v4, 0.0  ;;  %v1552_v35 = vsel %vm486_vm0, %v1516_v7, 0.0 }
  0x58   : > { %v1540_v19 = vld [vmem:[%s1331_s19 + $0x1c0] sm:$0xff]  ;;  %2153 = vst [vmem:[#allocation24_spill] sm:$0xff] %v1544_v24  ;;  %2155 = vst [vmem:[#allocation26_spill] sm:$0xff] %v1552_v35  ;;  %v1558_v11 = vld [vmem:[%s1331_s19 + $0x1d0] sm:$0xff]  ;;  %v510_v62 = vsel %vm486_vm0, %v1531_v13, 0.0  ;;  %s822_s10 = scalar_lea.sflag [#allocation4], %s1328_s15 }
  0x59   : > { %v503_v61 = vadd.f32 %v502_v25, %v501_v48  ;;  %v1548_v25 = vsel %vm486_vm0, %v1513_v5, 0.0  ;;  %v1555_v48 = vld [vmem:[%s1331_s19 + $0x1c8] sm:$0xff]  ;;  %v1561_v10 = vld [vmem:[%s1331_s19 + $0x1d8] sm:$0xff]  ;;  %v1576_v35 = vld [vmem:[%s1331_s19 + $0x1e0] sm:$0xff]  ;;  %s1005_s9 = scalar_lea.vmem %s838_s28, 32  ;;  %s1099_s3 = smov [#allocation3]  }
  0x5a   : > { %2154 = vst [vmem:[#allocation25_spill] sm:$0xff] %v1548_v25  ;;  %v1573_v25 = vsel %vm486_vm0, %v1540_v19, 0.0  ;;  %2159 = vst [vmem:[#allocation30_spill] sm:$0xff] %v1576_v35  ;;  %v1579_v24 = vld [vmem:[%s1331_s19 + $0x1e8] sm:$0xff]  ;;  %v1582_v8 = vld [vmem:[%s1331_s19 + $0x1f0] sm:$0xff]  ;;  %p1006_p1 = scmp.ne.s32.totalorder %s838_s28, %s1005_s9  ;;  %s1009_s4 = sshll.u32 %s1099_s3, 4  ;;  %s1010_s4 = int_to_ptr.vmem [resolvable:$false] %s1009_s4 }
  0x5b   : > { %v505_v23 = vadd.f32 %v504_v29, %v503_v61  ;;  %v1565_v29 = vsel %vm486_vm0, %v1534_v14, 0.0  ;;  %v1569_v61 = vsel %vm486_vm0, %v1537_v16, 0.0  ;;  %2158 = vst [vmem:[#allocation29_spill] sm:$0xff] %v1573_v25  ;;  %2160 = vst [vmem:[#allocation31_spill] sm:$0xff] %v1579_v24  ;;  %v1594_v25 = vsel %vm486_vm0, %v1561_v10, 0.0  ;;  %v1597_v63 = vld [vmem:[%s1331_s19 + $0x1f8] sm:$0xff]  ;;  %p1012_p4 = scmp.lt.s32.totalorder %s838_s28, %s1010_s4 }
  0x5c   : > { %2156 = vst [vmem:[#allocation27_spill] sm:$0xff] %v1565_v29  ;;  %2157 = vst [vmem:[#allocation28_spill] sm:$0xff] %v1569_v61  ;;  %v1586_v29 = vsel %vm486_vm0, %v1555_v48, 0.0  ;;  %v1590_v61 = vsel %vm486_vm0, %v1558_v11, 0.0  ;;  %v1617_v57 = vsel %vm486_vm0, %v1597_v63, 0.0  ;;  %v1625_v51 = vld [vmem:[%s1331_s19 + $0x80] sm:$0xff]  ;;  %p1007_p2 = pnand %p1006_p1, %p1170_p8 }
  0x5d   : > { %2161 = vst [vmem:[#allocation32_spill] sm:$0xff] %v1582_v8  ;;  %v507_v3 = vadd.f32 %v506_v30, %v505_v23  ;;  %2162 = vst [vmem:[#allocation33_spill] sm:$0xff] %v1586_v29  ;;  %v1603_v30 = vsel %vm486_vm0, %v1576_v35, 0.0  ;;  %v1607_v23 = vsel %vm486_vm0, %v1579_v24, 0.0  ;;  %v1628_v50 = vld [vmem:[%s1331_s19 + $0x88] sm:$0xff]  ;;  %v518_v43 = vsel %vm486_vm0, %v1625_v51, 0.0 }
  0x5e   : > { %2163 = vst [vmem:[#allocation34_spill] sm:$0xff] %v1590_v61  ;;  %2164 = vst [vmem:[#allocation35_spill] sm:$0xff] %v1594_v25  ;;  %v1611_v61 = vsel %vm486_vm0, %v1582_v8, 0.0  ;;  %v435_v25 = vld [vmem:[%s1331_s19 + $0x68] sm:$0xff]  ;;  %v1654_v42 = vld [vmem:[%s1331_s19 + $0xb0] sm:$0xff]  ;;  %p1008_p3 = pneg %p1007_p2  ;;  %s1011_s5 = scalar_lea.vmem %s1010_s4, 64 }
  0x5f   : > { %2165 = vst [vmem:[#allocation36_spill] sm:$0xff] %v1597_v63  ;;  %2166 = vst [vmem:[#allocation37_spill] sm:$0xff] %v1603_v30  ;;  %v509_v29 = vadd.f32 %v1402_v31, %v507_v3  ;;  %v512_v56 = vsel %vm486_vm0, %v435_v25, 0.0  ;;  %v436_v30 = vld [vmem:[%s1331_s19 + $0x70] sm:$0xff]  ;;  %v620_v31 = vmul.f32 %v1334_v0, %v1334_v0  ;;  %v621_v3 = vmul.f32 %v1337_v1, %v1337_v1  ;;  %v1651_v1 = vld [vmem:[%s1331_s19 + $0xa8] sm:$0xff]  ;;  %p1013_p5 = scmp.lt.s32.totalorder %s1011_s5, %s1005_s9 }
  0x60   : > { %2167 = vst [vmem:[#allocation38_spill] sm:$0xff] %v1607_v23  ;;  %2168 = vst [vmem:[#allocation39_spill] sm:$0xff] %v1611_v61  ;;  %v1622_v23 = vld [vmem:[%s1331_s19 + $0x78] sm:$0xff]  ;;  %v514_v61 = vsel %vm486_vm0, %v436_v30, 0.0  ;;  %v520_v0 = vsel %vm486_vm0, %v1628_v50, 0.0  ;;  %v1688_v2 = vld [vmem:[%s1331_s19 + $0xe0] sm:$0xff] }
  0x61   : > { %2169 = vst [vmem:[#allocation40_spill] sm:$0xff] %v1617_v57  ;;  %v511_v55 = vadd.f32 %v510_v62, %v509_v29  ;;  %2170 = vst [vmem:[#allocation41_spill] sm:$0xff] %v1622_v23  ;;  %v1636_v57 = vld [vmem:[%s1331_s19 + $0x90] sm:$0xff]  ;;  %v1639_v62 = vld [vmem:[%s1331_s19 + $0x98] sm:$0xff]  ;;  %v516_v44 = vsel %vm486_vm0, %v1622_v23, 0.0  ;;  %p1014_p6 = por %p1013_p5, %p1012_p4 }
  0x62   : > { %2171 = vst [vmem:[#allocation42_spill] sm:$0xff] %v1625_v51  ;;  %2172 = vst [vmem:[#allocation43_spill] sm:$0xff] %v1628_v50  ;;  %v1642_v29 = vld [vmem:[%s1331_s19 + $0xa0] sm:$0xff]  ;;  %v1657_v38 = vld [vmem:[%s1331_s19 + $0xb8] sm:$0xff] }
  0x63   : > { %2173 = vst [vmem:[#allocation44_spill] sm:$0xff] %v1636_v57  ;;  %2174 = vst [vmem:[#allocation45_spill] sm:$0xff] %v1639_v62  ;;  %v513_v49 = vadd.f32 %v512_v56, %v511_v55  ;;  %v522_v55 = vsel %vm486_vm0, %v1636_v57, 0.0  ;;  %v524_v56 = vsel %vm486_vm0, %v1639_v62, 0.0  ;;  %v526_v37 = vsel %vm486_vm0, %v1642_v29, 0.0  ;;  %v1668_v50 = vld [vmem:[%s1331_s19 + $0xc0] sm:$0xff]  ;;  %p1015_p7 = pnand %p1014_p6, %p1008_p3 }
  0x64   : > { %2175 = vst [vmem:[#allocation46_spill] sm:$0xff] %v1642_v29  ;;  %2176 = vst [vmem:[#allocation47_spill] sm:$0xff] %v1651_v1  ;;  %v1671_v51 = vld [vmem:[%s1331_s19 + $0xc8] sm:$0xff]  ;;  %v1674_v23 = vld [vmem:[%s1331_s19 + $0xd0] sm:$0xff]  ;;  %v528_v57 = vsel %vm486_vm0, %v1651_v1, 0.0  ;;  %v1680_v62 = vsel %vm486_vm0, %v1654_v42, 0.0  ;;  %v623_v29 = vmul.f32 %v1349_v6, %v1349_v6 }
  0x65   : > { %2177 = vst [vmem:[#allocation48_spill] sm:$0xff] %v1654_v42  ;;  %2178 = vst [vmem:[#allocation49_spill] sm:$0xff] %v1657_v38  ;;  %v515_v63 = vadd.f32 %v514_v61, %v513_v49  ;;  %v1685_v8 = vld [vmem:[%s1331_s19 + $0xd8] sm:$0xff]  ;;  %v1692_v24 = vsel %vm486_vm0, %v1657_v38, 0.0  ;;  %v1696_v49 = vsel %vm486_vm0, %v1668_v50, 0.0  ;;  %v1700_v61 = vsel %vm486_vm0, %v1671_v51, 0.0 }
  0x66   : > { %2179 = vst [vmem:[#allocation50_spill] sm:$0xff] %v1668_v50  ;;  %2180 = vst [vmem:[#allocation51_spill] sm:$0xff] %v1671_v51  ;;  %v1704_v42 = vsel %vm486_vm0, %v1674_v23, 0.0  ;;  %v1707_v6 = vld [vmem:[%s1331_s19 + $0xe8] sm:$0xff]  ;;  %v1710_v1 = vld [vmem:[%s1331_s19 + $0xf0] sm:$0xff]  ;;  %v1714_v38 = vsel %vm486_vm0, %v1685_v8, 0.0  ;;  %v624_v51 = vmul.f32 %v1354_v9, %v1354_v9  ;;  %v628_v9 = vmul.f32 %v1370_v18, %v1370_v18 }
  0x67   : > { %2181 = vst [vmem:[#allocation52_spill] sm:$0xff] %v1674_v23  ;;  %2182 = vst [vmem:[#allocation53_spill] sm:$0xff] %v1685_v8  ;;  %v517_v35 = vadd.f32 %v516_v44, %v515_v63  ;;  %v1718_v50 = vsel %vm486_vm0, %v1688_v2, 0.0  ;;  %v1724_v23 = vsel %vm486_vm0, %v1707_v6, 0.0  ;;  %v625_v44 = vmul.f32 %v1359_v12, %v1359_v12 }
  0x68   : > { %2183 = vst [vmem:[#allocation54_spill] sm:$0xff] %v1688_v2  ;;  %2184 = vst [vmem:[#allocation55_spill] sm:$0xff] %v1704_v42  ;;  %v1728_v42 = vsel %vm486_vm0, %v1710_v1, 0.0  ;;  %v626_v63 = vmul.f32 %v1364_v15, %v1364_v15  ;;  %v627_v2 = vmul.f32 %v1367_v17, %v1367_v17  ;;  %v632_v12 = vmul.f32 %v1531_v13, %v1531_v13 }
  0x69   : > { %2185 = vst [vmem:[#allocation56_spill] sm:$0xff] %v1707_v6  ;;  %2186 = vst [vmem:[#allocation57_spill] sm:$0xff] %v1710_v1  ;;  %v519_v8 = vadd.f32 %v518_v43, %v517_v35  ;;  %v629_v6 = vmul.f32 %v1375_v20, %v1375_v20  ;;  %v630_v1 = vmul.f32 %v1378_v21, %v1378_v21 }
  0x6a   : > { %2187 = vst [vmem:[#allocation58_spill] sm:$0xff] %v1728_v42  ;;  %v631_v42 = vmul.f32 %v1381_v22, %v1381_v22  ;;  %v1746_v15 = vmul.f32 %v435_v25, %v435_v25  ;;  %v1748_v35 = vmul.f32 %v436_v30, %v436_v30  ;;  %v653_v17 = vmul.f32 %v1388_v26, %v1388_v26 }
  0x6b   : > { %v521_v43 = vadd.f32 %v520_v0, %v519_v8  ;;  %v654_v18 = vmul.f32 %v1391_v27, %v1391_v27  ;;  %v655_v20 = vmul.f32 %v1394_v28, %v1394_v28  ;;  %v656_v21 = vmul.f32 %v1405_v32, %v1405_v32 }
  0x6c   : > { %v657_v22 = vmul.f32 %v1408_v33, %v1408_v33  ;;  %v658_v8 = vmul.f32 %v1411_v34, %v1411_v34  ;;  %v659_v25 = vmul.f32 %v1426_v39, %v1426_v39  ;;  %v660_v26 = vmul.f32 %v1429_v40, %v1429_v40 }
  0x6d   : > { %v523_v13 = vadd.f32 %v522_v55, %v521_v43  ;;  %v661_v27 = vmul.f32 %v1432_v41, %v1432_v41  ;;  %v662_v28 = vmul.f32 %v1447_v45, %v1447_v45  ;;  %v663_v32 = vmul.f32 %v1450_v46, %v1450_v46 }
  0x6e   : > { %v684_v33 = vsel %vm486_vm0, %v620_v31, 0.0  ;;  %v685_v34 = vsel %vm486_vm0, %v621_v3, 0.0  ;;  %v664_v39 = vmul.f32 %v1453_v47, %v1453_v47  ;;  %v687_v40 = vsel %vm486_vm0, %v622_v36, 0.0 }
  0x6f   : > { %v525_v30 = vadd.f32 %v524_v56, %v523_v13  ;;  %v686_v0 = vadd.f32 %v685_v34, %v684_v33  ;;  %v665_v41 = vmul.f32 %v1468_v52, %v1468_v52  ;;  %v666_v45 = vmul.f32 %v1471_v53, %v1471_v53  ;;  %v2188_v13 = vld [vmem:[#allocation30_spill] sm:$0xff]  ;;  %v2189_v33 = vld [vmem:[#allocation31_spill] sm:$0xff]  ;;  %v2190_v34 = vld [vmem:[#allocation32_spill] sm:$0xff] }
  0x70   : > { %v667_v46 = vmul.f32 %v1474_v54, %v1474_v54  ;;  %v689_v31 = vsel %vm486_vm0, %v623_v29, 0.0  ;;  %v668_v3 = vmul.f32 %v1489_v58, %v1489_v58  ;;  %v669_v47 = vmul.f32 %v1492_v59, %v1492_v59 }
  0x71   : > { %v527_v55 = vadd.f32 %v526_v37, %v525_v30  ;;  %v688_v56 = vadd.f32 %v687_v40, %v686_v0  ;;  %v670_v36 = vmul.f32 %v1495_v60, %v1495_v60  ;;  %v671_v52 = vmul.f32 %v1510_v4, %v1510_v4  ;;  %v2191_v30 = vld [vmem:[#allocation36_spill] sm:$0xff] }
  0x72   : > { %v672_v53 = vmul.f32 %v1513_v5, %v1513_v5  ;;  %v691_v54 = vsel %vm486_vm0, %v624_v51, 0.0  ;;  %v673_v37 = vmul.f32 %v1516_v7, %v1516_v7  ;;  %v674_v58 = vmul.f32 %v1534_v14, %v1534_v14 }
  0x73   : > { %v529_v29 = vadd.f32 %v528_v57, %v527_v55  ;;  %v690_v59 = vadd.f32 %v689_v31, %v688_v56  ;;  %v675_v43 = vmul.f32 %v1537_v16, %v1537_v16  ;;  %v676_v60 = vmul.f32 %v1540_v19, %v1540_v19 }
  0x74   : > { %v677_v4 = vmul.f32 %v1555_v48, %v1555_v48  ;;  %v693_v5 = vsel %vm486_vm0, %v625_v44, 0.0  ;;  %v678_v57 = vmul.f32 %v1558_v11, %v1558_v11  ;;  %v679_v7 = vmul.f32 %v1561_v10, %v1561_v10 }
  0x75   : > { %v531_v51 = vadd.f32 %v1680_v62, %v529_v29  ;;  %v692_v14 = vadd.f32 %v691_v54, %v690_v59  ;;  %v680_v16 = vmul.f32 %v2188_v13, %v2188_v13  ;;  %v681_v19 = vmul.f32 %v2189_v33, %v2189_v33 }
  0x76   : > { %v682_v48 = vmul.f32 %v2190_v34, %v2190_v34  ;;  %v695_v44 = vsel %vm486_vm0, %v626_v63, 0.0  ;;  %v683_v11 = vmul.f32 %v2191_v30, %v2191_v30  ;;  %v697_v10 = vsel %vm486_vm0, %v627_v2, 0.0  ;;  %v2193_v34 = vld [vmem:[#allocation41_spill] sm:$0xff] }
  0x77   : > { %v533_v62 = vadd.f32 %v1692_v24, %v531_v51  ;;  %v694_v0 = vadd.f32 %v693_v5, %v692_v14  ;;  %v699_v40 = vsel %vm486_vm0, %v628_v9, 0.0  ;;  %v701_v31 = vsel %vm486_vm0, %v629_v6, 0.0 }
  0x78   : > { %v703_v55 = vsel %vm486_vm0, %v630_v1, 0.0  ;;  %v705_v56 = vsel %vm486_vm0, %v631_v42, 0.0  ;;  %v707_v63 = vsel %vm486_vm0, %v632_v12, 0.0  ;;  %v1829_v24 = vsel %vm486_vm0, %v653_v17, 0.0 }
  0x79   : > { %v535_v54 = vadd.f32 %v1696_v49, %v533_v62  ;;  %v696_v29 = vadd.f32 %v695_v44, %v694_v0  ;;  %v1832_v59 = vsel %vm486_vm0, %v654_v18, 0.0  ;;  %v1835_v2 = vsel %vm486_vm0, %v655_v20, 0.0  ;;  %v1936_v44 = vld [vmem:[%s1331_s19 + $0x100] sm:$0xff] }
  0x7a   : > { %v1838_v6 = vsel %vm486_vm0, %v656_v21, 0.0  ;;  %v1841_v1 = vsel %vm486_vm0, %v657_v22, 0.0  ;;  %v1845_v9 = vsel %vm486_vm0, %v658_v8, 0.0  ;;  %v1848_v12 = vsel %vm486_vm0, %v659_v25, 0.0  ;;  %v2194_v62 = vld [vmem:[#allocation58_spill] sm:$0xff] }
  0x7b   : > { %v537_v42 = vadd.f32 %v1700_v61, %v535_v54  ;;  %v698_v49 = vadd.f32 %v697_v10, %v696_v29  ;;  %v1851_v17 = vsel %vm486_vm0, %v660_v26, 0.0  ;;  %v1854_v18 = vsel %vm486_vm0, %v661_v27, 0.0  ;;  %v2192_v61 = vld [vmem:[#allocation55_spill] sm:$0xff]  ;;  %v2195_v0 = vld [vmem:[#allocation42_spill] sm:$0xff] }
  0x7c   : > { %v1857_v20 = vsel %vm486_vm0, %v662_v28, 0.0  ;;  %v1860_v21 = vsel %vm486_vm0, %v663_v32, 0.0  ;;  %v1864_v8 = vsel %vm486_vm0, %v664_v39, 0.0  ;;  %v1867_v25 = vsel %vm486_vm0, %v665_v41, 0.0 }
  0x7d   : > { %v539_v22 = vadd.f32 %v2192_v61, %v537_v42  ;;  %v700_v5 = vadd.f32 %v699_v40, %v698_v49  ;;  %v1870_v26 = vsel %vm486_vm0, %v666_v45, 0.0  ;;  %v1873_v27 = vsel %vm486_vm0, %v667_v46, 0.0  ;;  %v2197_v42 = vld [vmem:[#allocation44_spill] sm:$0xff]  ;;  %v2198_v61 = vld [vmem:[#allocation6_spill] sm:$0xff] }
  0x7e   : > { %v1876_v28 = vsel %vm486_vm0, %v668_v3, 0.0  ;;  %v1879_v32 = vsel %vm486_vm0, %v669_v47, 0.0  ;;  %v1883_v14 = vsel %vm486_vm0, %v670_v36, 0.0  ;;  %v1886_v41 = vsel %vm486_vm0, %v671_v52, 0.0 }
  0x7f   : > { %v541_v51 = vadd.f32 %v1714_v38, %v539_v22  ;;  %v702_v39 = vadd.f32 %v701_v31, %v700_v5  ;;  %v1889_v45 = vsel %vm486_vm0, %v672_v53, 0.0  ;;  %v1892_v46 = vsel %vm486_vm0, %v673_v37, 0.0 }
  0x80   : > { %v1895_v3 = vsel %vm486_vm0, %v674_v58, 0.0  ;;  %v1898_v47 = vsel %vm486_vm0, %v675_v43, 0.0  ;;  %v1902_v13 = vsel %vm486_vm0, %v676_v60, 0.0  ;;  %v1905_v52 = vsel %vm486_vm0, %v677_v4, 0.0 }
  0x81   : > { %v543_v38 = vadd.f32 %v1718_v50, %v541_v51  ;;  %v704_v36 = vadd.f32 %v703_v55, %v702_v39  ;;  %v1908_v53 = vsel %vm486_vm0, %v678_v57, 0.0  ;;  %v1911_v37 = vsel %vm486_vm0, %v679_v7, 0.0  ;;  %v1920_v50 = vld [vmem:[%s1331_s19 + $0xf8] sm:$0xff]  ;;  %v2196_v55 = vld [vmem:[#allocation43_spill] sm:$0xff] }
  0x82   : > { %v1914_v58 = vsel %vm486_vm0, %v680_v16, 0.0  ;;  %v1917_v43 = vsel %vm486_vm0, %v681_v19, 0.0  ;;  %v1924_v4 = vsel %vm486_vm0, %v682_v48, 0.0  ;;  %v1927_v57 = vsel %vm486_vm0, %v683_v11, 0.0  ;;  %v2199_v51 = vld [vmem:[#allocation45_spill] sm:$0xff] }
  0x83   : > { %v545_v60 = vadd.f32 %v1724_v23, %v543_v38  ;;  %v706_v33 = vadd.f32 %v705_v56, %v704_v36  ;;  %v548_v7 = vsel %vm486_vm0, %v1920_v50, 0.0  ;;  %v635_v16 = vmul.f32 %v2193_v34, %v2193_v34  ;;  %v2200_v38 = vld [vmem:[#allocation7_spill] sm:$0xff] }
  0x84   : > { %v709_v19 = vsel %vm486_vm0, %v1746_v15, 0.0  ;;  %v550_v48 = vsel %vm486_vm0, %v1936_v44, 0.0  ;;  %v636_v11 = vmul.f32 %v2195_v0, %v2195_v0  ;;  %v711_v10 = vsel %vm486_vm0, %v1748_v35, 0.0  ;;  %v2204_v0 = vld [vmem:[#allocation9_spill] sm:$0xff] }
  0x85   : > { %v547_v23 = vadd.f32 %v2194_v62, %v545_v60  ;;  %v708_v30 = vadd.f32 %v707_v63, %v706_v33  ;;  %v637_v56 = vmul.f32 %v2196_v55, %v2196_v55  ;;  %v713_v15 = vsel %vm486_vm0, %v635_v16, 0.0  ;;  %v2201_v33 = vld [vmem:[#allocation46_spill] sm:$0xff]  ;;  %v2202_v16 = vld [vmem:[#allocation8_spill] sm:$0xff] }
  0x86   : > { %v638_v63 = vmul.f32 %v2197_v42, %v2197_v42  ;;  %v715_v49 = vsel %vm486_vm0, %v636_v11, 0.0  ;;  %v639_v35 = vmul.f32 %v2199_v51, %v2199_v51 }
  0x87   : > { %v549_v40 = vadd.f32 %v548_v7, %v547_v23  ;;  %v710_v31 = vadd.f32 %v709_v19, %v708_v30  ;;  %v717_v39 = vsel %vm486_vm0, %v637_v56, 0.0  ;;  %v640_v7 = vmul.f32 %v2201_v33, %v2201_v33  ;;  %v2203_v23 = vld [vmem:[#allocation47_spill] sm:$0xff]  ;;  %v2206_v56 = vld [vmem:[#allocation10_spill] sm:$0xff] }
  0x88   : > { %v719_v34 = vsel %vm486_vm0, %v638_v63, 0.0  ;;  %v641_v30 = vmul.f32 %v2203_v23, %v2203_v23 }
  0x89   : > { %v551_v54 = vadd.f32 %v550_v48, %v549_v40  ;;  %v712_v29 = vadd.f32 %v711_v10, %v710_v31  ;;  %v721_v48 = vsel %vm486_vm0, %v639_v35, 0.0  ;;  %v2205_v40 = vld [vmem:[#allocation48_spill] sm:$0xff]  ;;  %v723_v55 = vsel %vm486_vm0, %v640_v7, 0.0 }
  0x8a   : > { %v642_v31 = vmul.f32 %v2205_v40, %v2205_v40  ;;  %v725_v63 = vsel %vm486_vm0, %v641_v30, 0.0 }
  0x8b   : > { %v553_v22 = vadd.f32 %v2198_v61, %v551_v54  ;;  %v714_v5 = vadd.f32 %v713_v15, %v712_v29  ;;  %v2207_v29 = vld [vmem:[#allocation49_spill] sm:$0xff] }
  0x8c   : > { %v643_v42 = vmul.f32 %v2207_v29, %v2207_v29  ;;  %v727_v35 = vsel %vm486_vm0, %v642_v31, 0.0 }
  0x8d   : > { %v555_v36 = vadd.f32 %v2200_v38, %v553_v22  ;;  %v716_v60 = vadd.f32 %v715_v49, %v714_v5  ;;  %v2208_v49 = vld [vmem:[#allocation11_spill] sm:$0xff]  ;;  %v2209_v5 = vld [vmem:[#allocation50_spill] sm:$0xff] }
  0x8e   : > { %v644_v51 = vmul.f32 %v2209_v5, %v2209_v5  ;;  %v729_v7 = vsel %vm486_vm0, %v643_v42, 0.0 }
  0x8f   : > { %v557_v19 = vadd.f32 %v2202_v16, %v555_v36  ;;  %v718_v62 = vadd.f32 %v717_v39, %v716_v60  ;;  %v2210_v39 = vld [vmem:[#allocation12_spill] sm:$0xff]  ;;  %v2211_v60 = vld [vmem:[#allocation51_spill] sm:$0xff] }
  0x90   : > { %v645_v33 = vmul.f32 %v2211_v60, %v2211_v60  ;;  %v731_v30 = vsel %vm486_vm0, %v644_v51, 0.0 }
  0x91   : > { %v559_v11 = vadd.f32 %v2204_v0, %v557_v19  ;;  %v720_v10 = vadd.f32 %v719_v34, %v718_v62  ;;  %v2212_v34 = vld [vmem:[#allocation13_spill] sm:$0xff]  ;;  %v2213_v62 = vld [vmem:[#allocation52_spill] sm:$0xff] }
  0x92   : > { %v646_v23 = vmul.f32 %v2213_v62, %v2213_v62  ;;  %v733_v31 = vsel %vm486_vm0, %v645_v33, 0.0 }
  0x93   : > { %v561_v15 = vadd.f32 %v2206_v56, %v559_v11  ;;  %v722_v54 = vadd.f32 %v721_v48, %v720_v10  ;;  %v2214_v48 = vld [vmem:[#allocation14_spill] sm:$0xff]  ;;  %v2215_v10 = vld [vmem:[#allocation53_spill] sm:$0xff] }
  0x94   : > { %v647_v40 = vmul.f32 %v2215_v10, %v2215_v10  ;;  %v735_v42 = vsel %vm486_vm0, %v646_v23, 0.0  ;;  %v2223_v23 = vld [vmem:[#allocation19_spill] sm:$0xff]  ;;  %v2224_v10 = vld [vmem:[#allocation20_spill] sm:$0xff] }
  0x95   : > { %v563_v61 = vadd.f32 %v2208_v49, %v561_v15  ;;  %v724_v22 = vadd.f32 %v723_v55, %v722_v54  ;;  %v2216_v55 = vld [vmem:[#allocation15_spill] sm:$0xff]  ;;  %v2217_v54 = vld [vmem:[#allocation54_spill] sm:$0xff] }
  0x96   : > { %v648_v29 = vmul.f32 %v2217_v54, %v2217_v54  ;;  %v737_v51 = vsel %vm486_vm0, %v647_v40, 0.0 }
  0x97   : > { %v565_v38 = vadd.f32 %v2210_v39, %v563_v61  ;;  %v726_v36 = vadd.f32 %v725_v63, %v724_v22  ;;  %v2218_v63 = vld [vmem:[#allocation16_spill] sm:$0xff] }
  0x98   : > { %v2219_v22 = vld [vmem:[#allocation56_spill] sm:$0xff]  ;;  %v739_v33 = vsel %vm486_vm0, %v648_v29, 0.0  ;;  %v2226_v29 = vld [vmem:[#allocation22_spill] sm:$0xff] }
  0x99   : > { %v567_v16 = vadd.f32 %v2212_v34, %v565_v38  ;;  %v728_v19 = vadd.f32 %v727_v35, %v726_v36  ;;  %v649_v5 = vmul.f32 %v2219_v22, %v2219_v22  ;;  %v2220_v35 = vld [vmem:[#allocation17_spill] sm:$0xff] }
  0x9a   : > { %v2221_v36 = vld [vmem:[#allocation57_spill] sm:$0xff] }
  0x9b   : > { %v569_v0 = vadd.f32 %v2214_v48, %v567_v16  ;;  %v730_v11 = vadd.f32 %v729_v7, %v728_v19  ;;  %v650_v60 = vmul.f32 %v2221_v36, %v2221_v36  ;;  %v2222_v7 = vld [vmem:[#allocation18_spill] sm:$0xff]  ;;  %v651_v19 = vmul.f32 %v1920_v50, %v1920_v50 }
  0x9c   : > { %v741_v62 = vsel %vm486_vm0, %v649_v5, 0.0  ;;  %v2228_v5 = vld [vmem:[#allocation24_spill] sm:$0xff]  ;;  %v2230_v36 = vld [vmem:[#allocation26_spill] sm:$0xff] }
  0x9d   : > { %v571_v56 = vadd.f32 %v2216_v55, %v569_v0  ;;  %v732_v15 = vadd.f32 %v731_v30, %v730_v11  ;;  %v652_v0 = vmul.f32 %v1936_v44, %v1936_v44  ;;  %v743_v11 = vsel %vm486_vm0, %v650_v60, 0.0 }
  0x9e   : > { %v745_v55 = vsel %vm486_vm0, %v651_v19, 0.0  ;;  %v2232_v19 = vld [vmem:[#allocation28_spill] sm:$0xff] }
  0x9f   : > { %v573_v49 = vadd.f32 %v2218_v63, %v571_v56  ;;  %v734_v61 = vadd.f32 %v733_v31, %v732_v15  ;;  %v2225_v56 = vld [vmem:[#allocation21_spill] sm:$0xff]  ;;  %v747_v50 = vsel %vm486_vm0, %v652_v0, 0.0 }
  0xa0   : > { %v2234_v0 = vld [vmem:[#allocation33_spill] sm:$0xff] }
  0xa1   : > { %v575_v39 = vadd.f32 %v2220_v35, %v573_v49  ;;  %v736_v38 = vadd.f32 %v735_v42, %v734_v61  ;;  %v2227_v49 = vld [vmem:[#allocation23_spill] sm:$0xff]  ;;  %v2229_v35 = vld [vmem:[#allocation25_spill] sm:$0xff] }
  0xa3   : > { %v577_v34 = vadd.f32 %v2222_v7, %v575_v39  ;;  %v738_v16 = vadd.f32 %v737_v51, %v736_v38  ;;  %v2231_v7 = vld [vmem:[#allocation27_spill] sm:$0xff] }
  0xa5   : > { %v579_v30 = vadd.f32 %v2223_v23, %v577_v34  ;;  %v740_v48 = vadd.f32 %v739_v33, %v738_v16 }
  0xa7   : > { %v581_v40 = vadd.f32 %v2224_v10, %v579_v30  ;;  %v742_v31 = vadd.f32 %v741_v62, %v740_v48  ;;  %v2233_v30 = vld [vmem:[#allocation29_spill] sm:$0xff]  ;;  %v2235_v10 = vld [vmem:[#allocation34_spill] sm:$0xff] }
  0xa9   : > { %v583_v15 = vadd.f32 %v2225_v56, %v581_v40  ;;  %v744_v54 = vadd.f32 %v743_v11, %v742_v31  ;;  %v2236_v31 = vld [vmem:[#allocation35_spill] sm:$0xff]  ;;  %v2237_v56 = vld [vmem:[#allocation37_spill] sm:$0xff] }
  0xab   : > { %v585_v42 = vadd.f32 %v2226_v29, %v583_v15  ;;  %v746_v63 = vadd.f32 %v745_v55, %v744_v54  ;;  %v2238_v54 = vld [vmem:[#allocation38_spill] sm:$0xff]  ;;  %v2239_v29 = vld [vmem:[#allocation39_spill] sm:$0xff] }
  0xad   : > { %v587_v61 = vadd.f32 %v2227_v49, %v585_v42  ;;  %v748_v22 = vadd.f32 %v747_v50, %v746_v63  ;;  %v2240_v63 = vld [vmem:[#allocation40_spill] sm:$0xff] }
  0xaf   : > { %v589_v44 = vadd.f32 %v2228_v5, %v587_v61  ;;  %v750_v51 = vadd.f32 %v1829_v24, %v748_v22 }
  0xb1   : > { %v591_v39 = vadd.f32 %v2229_v35, %v589_v44  ;;  %v752_v38 = vadd.f32 %v1832_v59, %v750_v51 }
  0xb3   : > { %v593_v60 = vadd.f32 %v2230_v36, %v591_v39  ;;  %v754_v33 = vadd.f32 %v1835_v2, %v752_v38 }
  0xb5   : > { %v595_v34 = vadd.f32 %v2231_v7, %v593_v60  ;;  %v756_v16 = vadd.f32 %v1838_v6, %v754_v33 }
  0xb7   : > { %v597_v62 = vadd.f32 %v2232_v19, %v595_v34  ;;  %v758_v23 = vadd.f32 %v1841_v1, %v756_v16 }
  0xb9   : > { %v599_v48 = vadd.f32 %v2233_v30, %v597_v62  ;;  %v760_v24 = vadd.f32 %v1845_v9, %v758_v23 }
  0xbb   : > { %v601_v11 = vadd.f32 %v2234_v0, %v599_v48  ;;  %v762_v59 = vadd.f32 %v1848_v12, %v760_v24 }
  0xbd   : > { %v603_v40 = vadd.f32 %v2235_v10, %v601_v11  ;;  %v764_v2 = vadd.f32 %v1851_v17, %v762_v59 }
  0xbf   : > { %v605_v55 = vadd.f32 %v2236_v31, %v603_v40  ;;  %v766_v6 = vadd.f32 %v1854_v18, %v764_v2 }
  0xc1   : > { %v607_v15 = vadd.f32 %v2237_v56, %v605_v55  ;;  %v768_v1 = vadd.f32 %v1857_v20, %v766_v6 }
  0xc3   : > { %v609_v50 = vadd.f32 %v2238_v54, %v607_v15  ;;  %v770_v9 = vadd.f32 %v1860_v21, %v768_v1 }
  0xc5   : > { %v611_v42 = vadd.f32 %v2239_v29, %v609_v50  ;;  %v772_v12 = vadd.f32 %v1864_v8, %v770_v9 }
  0xc7   : > { %v613_v49 = vadd.f32 %v2240_v63, %v611_v42  ;;  %v774_v17 = vadd.f32 %v1867_v25, %v772_v12 }
  0xc9   : > { %v776_v61 = vadd.f32 %v1870_v26, %v774_v17 }
  0xcb   : > { %v778_v18 = vadd.f32 %v1873_v27, %v776_v61 }
  0xcd   : > { %v780_v22 = vadd.f32 %v1876_v28, %v778_v18  ;;  %v614_v28 = vrot.slane %v613_v49, 4 }
  0xcf   : > { %v782_v20 = vadd.f32 %v1879_v32, %v780_v22 }
  0xd1   : > { %v784_v5 = vadd.f32 %v1883_v14, %v782_v20 }
  0xd3   : > { %v786_v21 = vadd.f32 %v1886_v41, %v784_v5  ;;  %v615_v41 = vadd.f32 %v614_v28, %v613_v49 }
  0xd5   : > { %v788_v44 = vadd.f32 %v1889_v45, %v786_v21  ;;  %v616_v35 = vrot.slane %v615_v41, 2 }
  0xd7   : > { %v790_v8 = vadd.f32 %v1892_v46, %v788_v44  ;;  %v617_v39 = vadd.f32 %v616_v35, %v615_v41 }
  0xd9   : > { %v792_v51 = vadd.f32 %v1895_v3, %v790_v8  ;;  %v618_v38 = vrot.slane %v617_v39, 1 }
  0xdb   : > { %v794_v25 = vadd.f32 %v1898_v47, %v792_v51  ;;  %v619_v36 = vadd.f32 %v618_v38, %v617_v39 }
  0xdd   : > { %v796_v26 = vadd.f32 %v1902_v13, %v794_v25 }
  0xdf   : > { %v798_v27 = vadd.f32 %v1905_v52, %v796_v26 }
  0xe1   : > { %v800_v32 = vadd.f32 %v1908_v53, %v798_v27 }
  0xe3   : > { %v802_v14 = vadd.f32 %v1911_v37, %v800_v32 }
  0xe5   : > { %v804_v45 = vadd.f32 %v1914_v58, %v802_v14 }
  0xe7   : > { %v806_v46 = vadd.f32 %v1917_v43, %v804_v45 }
  0xe9   : > { %v808_v3 = vadd.f32 %v1924_v4, %v806_v46 }
  0xeb   : > { %v810_v47 = vadd.f32 %v1927_v57, %v808_v3 }
  0xed   : > { %v811_v13 = vrot.slane %v810_v47, 4 }
  0xef   : > { %v812_v52 = vadd.f32 %v811_v13, %v810_v47 }
  0xf1   : > { %v813_v53 = vrot.slane %v812_v52, 2 }
  0xf3   : > { %v814_v37 = vadd.f32 %v813_v53, %v812_v52 }
  0xf5   : > { %v815_v58 = vrot.slane %v814_v37, 1 }
  0xf7   : > { %v816_v43 = vadd.f32 %v815_v58, %v814_v37 }
  0xf9   : > { %v818_v4 = vsel %vm817_vm1, %v619_v36, %v816_v43 }
  0xfa   : > { %820 = vst.msk [vmem:[%s420_s27] sm:$0x3] %vm819_vm2, %v818_v4 }
  0xfb   : > { %1018 = shalt.err (!%p1015_p7)
}
  0xfc   : > { %s1019_s14 = scalar_lea.hbm %s2063_s2, 32  ;;  %s1023_s19 = scalar_lea.hbm %s2111_s1, 256 }
  0xfd   : > { %p1020_p10 = scmp.ne.s32.totalorder %s2063_s2, %s1019_s14  ;;  %p1024_p13 = scmp.lt.s32.totalorder %s2063_s2, %s2111_s1 }
  0xfe   : > { %p1025_p0 = scmp.lt.s32.totalorder %s1023_s19, %s1019_s14 }
  0xff   : > { %p1021_p11 = pnand %p1020_p10, %p1170_p8 }
 0x100   : > { %p1026_p1 = por %p1025_p0, %p1024_p13 }
 0x101   : > { %p1022_p12 = pneg %p1021_p11 }
 0x103   : > { %p1027_p2 = pnand %p1026_p1, %p1022_p12 }
 0x105   : > { %1030 = shalt.err (!%p1027_p2)
}
 0x106   : > { %934 = dma.vmem_to_hbm [thread:$0]  (%p1170_p8), %s838_s28, 32, %s2063_s2, %s822_s10  }
 0x107 PF: > { %p940_p3 = scmp.ge.s32.totalorder %s1097_s13, 2  ;;  %s849_s24 = sand.u32 1, %s1069_s6  }
 0x108   : > { %s850_s26 = scalar_lea.sflag [#allocation4], %s849_s24 }
 0x109   : > { %p937_p4 = pnand %p940_p3, %p1174_p9 }
 0x10b   : > { %p938_p5 = pneg %p937_p4 }
 0x10d   : > { %1064 = dma.done.wait (%p938_p5), %s850_s26, 32  }
 0x10e   : > { %1066 = vsyncadd (%p938_p5), %s850_s26, 4294967264  ;;  %s14_s13 = sadd.s32 1, %s1097_s13   ;;  %s2241_s6 = smov %s1073_s7 }
 0x10f   : > { %p11_p6 = scmp.ge.s32.totalorder %s14_s13, 10   ;;  %s2242_s7 = smov %s1077_s8 }
 0x110   : > { %s2243_s8 = smov %s1182_s25  ;;  %s2244_s9 = smov %s1089_s11 }
 0x111   : > { %s2245_s10 = smov %s1093_s12  ;;  %s2246_s11 = smov %s2249_s16 }
 0x112   : > { %s2247_s12 = smov %s2253_s17  ;;  %13 = sbr.rel (!%p11_p6) target bundleno = 5 (0x5), region = 102 }
 0x117   :  { %855 = vsyncpa [#allocation4], 1 }
 0x118   :  { %857 = vsyncpa [#allocation4 + $0x1], 1 }

</bundles_post_ra>
